<compile_context>
chip_gen: v6e
topology: v6e:2x2x1
jax: 0.10.0
libtpu: 0.0.40
codegen_flags: <defaults>
</compile_context>

<pallas_src>
import jax
import jax.numpy as jnp
import numpy as np
from jax import lax
from jax.experimental import pallas as pl
from jax.experimental.pallas import tpu as pltpu

LANES = 128
LOG_CLAMP = -100.0  # PyTorch BCELoss clamps each log term at -100


def _round_up(x, m):
    return ((x + m - 1) // m) * m


def _make_kernel(block_rows, rows, blocks_per_shard, num_full):
    """Build the kernel closure over static tiling parameters (Python ints)."""

    def kernel(recon_ref, x_ref, mu_ref, lv_ref, o_ref, acc_ref):
        s = pl.program_id(0)                     # shard (parallel axis)
        i = pl.program_id(1)                     # streaming block within shard
        gb = s * blocks_per_shard + i            # logical global block index

        @pl.when(i == 0)
        def _init():
            acc_ref[...] = jnp.zeros_like(acc_ref)

        def accumulate(r, t):
            log_r = jnp.maximum(jnp.log(r), LOG_CLAMP)
            log_1mr = jnp.maximum(jnp.log(1.0 - r), LOG_CLAMP)
            # t*log(r) + (1-t)*log(1-r) == log_1mr + t*(log_r - log_1mr)
            term = log_1mr + t * (log_r - log_1mr)
            # Pure VPU vreg adds into the (8,128) accumulator (no XLU / no
            # scalar loop-carried dependency in the hot loop).
            acc_ref[...] += term.reshape(block_rows // 8, 8, LANES).sum(axis=0)

        # Hot path: block lies entirely within the valid rows -> no mask work.
        @pl.when(gb < num_full)
        def _full_block():
            accumulate(recon_ref[...].astype(jnp.float32),
                       x_ref[...].astype(jnp.float32))

        # Tail / out-of-range blocks: mask rows >= rows to contribute exactly 0.
        # (recon=1, x=1 gives 1*0 + 0*(-100) = 0 under the -100 clamp.)
        @pl.when(gb >= num_full)
        def _masked_block():
            row_ids = gb * block_rows + lax.broadcasted_iota(
                jnp.int32, (block_rows, LANES), 0)
            valid = row_ids < rows
            r = jnp.where(valid, recon_ref[...].astype(jnp.float32), 1.0)
            t = jnp.where(valid, x_ref[...].astype(jnp.float32), 1.0)
            accumulate(r, t)

        @pl.when(i == blocks_per_shard - 1)
        def _finalize():
            bce = -jnp.sum(acc_ref[...], keepdims=True)                 # (1,1)
            # KL divergence from the small resident mu/logvar blocks; only
            # shard 0 adds it (computed once per shard finalize, negligible).
            mu = mu_ref[...].astype(jnp.float32)
            lv = lv_ref[...].astype(jnp.float32)
            kld = -0.5 * jnp.sum(1.0 + lv - mu * mu - jnp.exp(lv),
                                 keepdims=True)                          # (1,1)
            o_ref[...] = bce + jnp.where(s == 0, kld, 0.0)

    return kernel


def cvae_loss(recon_x, x, mu, logvar, *, block_rows=4096, num_shards=2):
    """Scalar CVAE loss: BCE(reduction='sum') + KLD, computed on-chip."""
    total = int(np.prod(recon_x.shape))
    assert int(np.prod(x.shape)) == total

    r_flat = recon_x.reshape(-1)
    x_flat = x.reshape(-1)

    # Lane-dense (rows, 128) view.  When total % 128 == 0 and rows >= 8 (the
    # common case, incl. image batches) this is a FREE contiguous reshape: no
    # HBM copy, no wrapper-side cast.
    rem = total % LANES
    if rem != 0:
        # TODO(synk): odd trailing size needs a small ones-pad (one extra copy).
        pad = LANES - rem
        r_flat = jnp.concatenate([r_flat, jnp.ones((pad,), r_flat.dtype)])
        x_flat = jnp.concatenate([x_flat, jnp.ones((pad,), x_flat.dtype)])
    rows = r_flat.size // LANES
    if rows < 8:  # tiny-input fallback: pad up to one (8,128) tile
        pad_rows = 8 - rows
        r_flat = jnp.concatenate(
            [r_flat, jnp.ones((pad_rows * LANES,), r_flat.dtype)])
        x_flat = jnp.concatenate(
            [x_flat, jnp.ones((pad_rows * LANES,), x_flat.dtype)])
        rows = 8
    r2 = r_flat.reshape(rows, LANES)
    x2 = x_flat.reshape(rows, LANES)

    mu2 = mu.reshape(1, -1)        # free reshape; stays resident in VMEM
    lv2 = logvar.reshape(1, -1)

    # Tile sizing: multiple of 8 sublanes, clamped to the (rounded-up) rows.
    br = max(8, min(int(block_rows), _round_up(rows, 8)))
    br = _round_up(br, 8)
    num_blocks = (rows + br - 1) // br
    n_shards = max(1, min(int(num_shards), num_blocks))
    bps = (num_blocks + n_shards - 1) // n_shards   # inner steps per shard
    num_full = rows // br                           # blocks needing no tail mask

    kernel = _make_kernel(br, rows, bps, num_full)

    # Two double-buffered input blocks + margin; stays within every chip's VMEM.
    item = r2.dtype.itemsize + x2.dtype.itemsize
    vmem_limit = int(min(48 << 20, 2 * br * LANES * item + (16 << 20)))

    big_map = lambda s, i: (jnp.minimum(s * bps + i, num_blocks - 1), 0)

    out = pl.pallas_call(
        kernel,
        out_shape=jax.ShapeDtypeStruct((n_shards, 1), jnp.float32),
        grid=(n_shards, bps),
        in_specs=[
            pl.BlockSpec((br, LANES), big_map),
            pl.BlockSpec((br, LANES), big_map),
            pl.BlockSpec(mu2.shape, lambda s, i: (0, 0)),   # resident
            pl.BlockSpec(lv2.shape, lambda s, i: (0, 0)),   # resident
        ],
        out_specs=pl.BlockSpec((1, 1), lambda s, i: (s, 0)),
        scratch_shapes=[pltpu.VMEM((8, LANES), jnp.float32)],
        compiler_params=pltpu.CompilerParams(
            dimension_semantics=("parallel", "arbitrary"),
            vmem_limit_bytes=vmem_limit,
        ),
    )(r2, x2, mu2, lv2)
    # Per-shard partials (KL folded into shard 0); tiny cross-shard sum here.
    return jnp.sum(out)


def reference_loss(recon_x, x, mu, logvar):
    """Pure-JAX reference matching PyTorch BCELoss(sum) + KLD."""
    r = recon_x.astype(jnp.float32)
    t = x.astype(jnp.float32)
    log_r = jnp.maximum(jnp.log(r), LOG_CLAMP)
    log_1mr = jnp.maximum(jnp.log(1.0 - r), LOG_CLAMP)
    bce = -jnp.sum(t * log_r + (1.0 - t) * log_1mr)
    kld = -0.5 * jnp.sum(1.0 + logvar.astype(jnp.float32)
                         - mu.astype(jnp.float32) ** 2
                         - jnp.exp(logvar.astype(jnp.float32)))
    return bce + kld


if __name__ == "__main__":
    # Small shapes consistent with a CVAE forward: images (2,4,16,16), latent 32.
    N, C, H, W, Z = 2, 4, 16, 16, 32
    key = jax.random.PRNGKey(0)
    k1, k2, k3, k4, k5, k6 = jax.random.split(key, 6)

    recon_x = jax.nn.sigmoid(jax.random.normal(k1, (N, C, H, W), jnp.float32))
    x = jax.random.uniform(k2, (N, C, H, W), jnp.float32, 0.0, 1.0)
    mu = jax.random.normal(k3, (N, Z), jnp.float32)
    logvar = 0.1 * jax.random.normal(k4, (N, Z), jnp.float32)
    ref = reference_loss(recon_x, x, mu, logvar)

    # 1) Default config (big blocks clamped to input, sharded parallel axis).
    loss = jax.block_until_ready(cvae_loss(recon_x, x, mu, logvar))
    np.testing.assert_allclose(np.asarray(loss), np.asarray(ref),
                               rtol=1e-3, atol=1e-2)

    # 2) Small blocks, single shard: exercises multi-step streaming accumulation.
    loss2 = jax.block_until_ready(
        cvae_loss(recon_x, x, mu, logvar, block_rows=8, num_shards=1))
    np.testing.assert_allclose(np.asarray(loss2), np.asarray(ref),
                               rtol=1e-3, atol=1e-2)

    # 3) Non-divisible row count + 2 shards: exercises the masked tail path.
    recon_b = jax.nn.sigmoid(jax.random.normal(k5, (2, 4, 24, 16), jnp.float32))
    x_b = jax.random.uniform(k6, (2, 4, 24, 16), jnp.float32, 0.0, 1.0)
    ref_b = reference_loss(recon_b, x_b, mu, logvar)
    loss3 = jax.block_until_ready(
        cvae_loss(recon_b, x_b, mu, logvar, block_rows=16, num_shards=2))
    np.testing.assert_allclose(np.asarray(loss3), np.asarray(ref_b),
                               rtol=1e-3, atol=1e-2)

    print("KERNEL_OK")
</pallas_src>

<mosaic_0001>
module attributes {stable_mosaic.version = 11 : i64} {
  func.func @kernel(%arg0: i32, %arg1: i32, %arg2: memref<16x128xf32, #tpu.memory_space<vmem>>, %arg3: memref<16x128xf32, #tpu.memory_space<vmem>>, %arg4: memref<1x64xf32, #tpu.memory_space<vmem>>, %arg5: memref<1x64xf32, #tpu.memory_space<vmem>>, %arg6: memref<1x1xf32, #tpu.memory_space<vmem>>, %arg7: memref<8x128xf32, #tpu.memory_space<vmem>>) attributes {dimension_semantics = [#tpu.dimension_semantics<parallel>, #tpu.dimension_semantics<arbitrary>], iteration_bounds = array<i64: 1, 1>, scalar_prefetch = 0 : i64, scratch_operands = 1 : i64, tpu.core_type = #tpu.core_type<tc>, window_params = [{transform_indices = @transform_0, window_bounds = array<i64: 16, 128>}, {transform_indices = @transform_1, window_bounds = array<i64: 16, 128>}, {pipeline_mode = #tpu.pipeline_mode<synchronous>, transform_indices = @transform_2, window_bounds = array<i64: 1, 64>}, {pipeline_mode = #tpu.pipeline_mode<synchronous>, transform_indices = @transform_3, window_bounds = array<i64: 1, 64>}, {transform_indices = @transform_4, window_bounds = array<i64: 1, 1>}]} {
    %c1_i32 = arith.constant 1 : i32
    %0 = arith.muli %arg0, %c1_i32 : i32
    %1 = arith.addi %0, %arg1 : i32
    %c0_i32 = arith.constant 0 : i32
    %2 = arith.cmpi eq, %arg1, %c0_i32 : i32
    %3 = arith.extui %2 : i1 to i32
    %c0_i32_0 = arith.constant 0 : i32
    %4 = arith.cmpi ne, %3, %c0_i32_0 : i32
    scf.if %4 {
      %cst = arith.constant 0.000000e+00 : f32
      %14 = vector.broadcast %cst : f32 to vector<8x128xf32>
      %c0 = arith.constant 0 : index
      %c0_7 = arith.constant 0 : index
      %15 = vector.load %arg7[%c0, %c0_7] : memref<8x128xf32, #tpu.memory_space<vmem>>, vector<8x128xf32>
      tpu.vector_store %arg7[%c0, %c0_7], %14 {strides = array<i32>} : memref<8x128xf32, #tpu.memory_space<vmem>>, vector<8x128xf32>,
    } else {
    }
    %c1_i32_1 = arith.constant 1 : i32
    %5 = arith.cmpi slt, %1, %c1_i32_1 : i32
    %6 = arith.extui %5 : i1 to i32
    %c0_i32_2 = arith.constant 0 : i32
    %7 = arith.cmpi ne, %6, %c0_i32_2 : i32
    scf.if %7 {
      %c0 = arith.constant 0 : index
      %c0_7 = arith.constant 0 : index
      %14 = vector.load %arg2[%c0, %c0_7] : memref<16x128xf32, #tpu.memory_space<vmem>>, vector<16x128xf32>
      %c0_8 = arith.constant 0 : index
      %c0_9 = arith.constant 0 : index
      %15 = vector.load %arg3[%c0_8, %c0_9] : memref<16x128xf32, #tpu.memory_space<vmem>>, vector<16x128xf32>
      %16 = math.log %14 : vector<16x128xf32>
      %cst = arith.constant -1.000000e+02 : f32
      %17 = vector.broadcast %cst : f32 to vector<16x128xf32>
      %18 = arith.maximumf %16, %17 : vector<16x128xf32>
      %cst_10 = arith.constant 1.000000e+00 : f32
      %19 = vector.broadcast %cst_10 : f32 to vector<16x128xf32>
      %20 = arith.subf %19, %14 : vector<16x128xf32>
      %21 = math.log %20 : vector<16x128xf32>
      %cst_11 = arith.constant -1.000000e+02 : f32
      %22 = vector.broadcast %cst_11 : f32 to vector<16x128xf32>
      %23 = arith.maximumf %21, %22 : vector<16x128xf32>
      %24 = arith.subf %18, %23 : vector<16x128xf32>
      %25 = arith.mulf %15, %24 : vector<16x128xf32>
      %26 = arith.addf %23, %25 : vector<16x128xf32>
      %c0_12 = arith.constant 0 : index
      %c0_13 = arith.constant 0 : index
      %27 = vector.load %arg7[%c0_12, %c0_13] : memref<8x128xf32, #tpu.memory_space<vmem>>, vector<8x128xf32>
      %28 = vector.shape_cast %26 : vector<16x128xf32> to vector<2x8x128xf32>
      %cst_14 = arith.constant dense<0.000000e+00> : vector<8x128xf32>
      %29 = vector.multi_reduction <add>, %28, %cst_14 [0] : vector<2x8x128xf32> to vector<8x128xf32>
      %30 = arith.addf %27, %29 : vector<8x128xf32>
      %c0_15 = arith.constant 0 : index
      %c0_16 = arith.constant 0 : index
      %31 = vector.load %arg7[%c0_15, %c0_16] : memref<8x128xf32, #tpu.memory_space<vmem>>, vector<8x128xf32>
      tpu.vector_store %arg7[%c0_15, %c0_16], %30 {strides = array<i32>} : memref<8x128xf32, #tpu.memory_space<vmem>>, vector<8x128xf32>,
    } else {
    }
    %c1_i32_3 = arith.constant 1 : i32
    %8 = arith.cmpi sge, %1, %c1_i32_3 : i32
    %9 = arith.extui %8 : i1 to i32
    %c0_i32_4 = arith.constant 0 : i32
    %10 = arith.cmpi ne, %9, %c0_i32_4 : i32
    scf.if %10 {
      %c16_i32 = arith.constant 16 : i32
      %14 = arith.muli %1, %c16_i32 : i32
      %15 = tpu.iota {dimensions = array<i32: 0>} : vector<16x128xi32>
      %16 = vector.broadcast %14 : i32 to vector<16x128xi32>
      %17 = arith.addi %16, %15 : vector<16x128xi32>
      %c16_i32_7 = arith.constant 16 : i32
      %18 = vector.broadcast %c16_i32_7 : i32 to vector<16x128xi32>
      %19 = arith.cmpi slt, %17, %18 : vector<16x128xi32>
      %c0 = arith.constant 0 : index
      %c0_8 = arith.constant 0 : index
      %20 = vector.load %arg2[%c0, %c0_8] : memref<16x128xf32, #tpu.memory_space<vmem>>, vector<16x128xf32>
      %cst = arith.constant 1.000000e+00 : f32
      %21 = vector.broadcast %cst : f32 to vector<16x128xf32>
      %22 = arith.select %19, %20, %21 : vector<16x128xi1>, vector<16x128xf32>
      %c0_9 = arith.constant 0 : index
      %c0_10 = arith.constant 0 : index
      %23 = vector.load %arg3[%c0_9, %c0_10] : memref<16x128xf32, #tpu.memory_space<vmem>>, vector<16x128xf32>
      %cst_11 = arith.constant 1.000000e+00 : f32
      %24 = vector.broadcast %cst_11 : f32 to vector<16x128xf32>
      %25 = arith.select %19, %23, %24 : vector<16x128xi1>, vector<16x128xf32>
      %26 = math.log %22 : vector<16x128xf32>
      %cst_12 = arith.constant -1.000000e+02 : f32
      %27 = vector.broadcast %cst_12 : f32 to vector<16x128xf32>
      %28 = arith.maximumf %26, %27 : vector<16x128xf32>
      %cst_13 = arith.constant 1.000000e+00 : f32
      %29 = vector.broadcast %cst_13 : f32 to vector<16x128xf32>
      %30 = arith.subf %29, %22 : vector<16x128xf32>
      %31 = math.log %30 : vector<16x128xf32>
      %cst_14 = arith.constant -1.000000e+02 : f32
      %32 = vector.broadcast %cst_14 : f32 to vector<16x128xf32>
      %33 = arith.maximumf %31, %32 : vector<16x128xf32>
      %34 = arith.subf %28, %33 : vector<16x128xf32>
      %35 = arith.mulf %25, %34 : vector<16x128xf32>
      %36 = arith.addf %33, %35 : vector<16x128xf32>
      %c0_15 = arith.constant 0 : index
      %c0_16 = arith.constant 0 : index
      %37 = vector.load %arg7[%c0_15, %c0_16] : memref<8x128xf32, #tpu.memory_space<vmem>>, vector<8x128xf32>
      %38 = vector.shape_cast %36 : vector<16x128xf32> to vector<2x8x128xf32>
      %cst_17 = arith.constant dense<0.000000e+00> : vector<8x128xf32>
      %39 = vector.multi_reduction <add>, %38, %cst_17 [0] : vector<2x8x128xf32> to vector<8x128xf32>
      %40 = arith.addf %37, %39 : vector<8x128xf32>
      %c0_18 = arith.constant 0 : index
      %c0_19 = arith.constant 0 : index
      %41 = vector.load %arg7[%c0_18, %c0_19] : memref<8x128xf32, #tpu.memory_space<vmem>>, vector<8x128xf32>
      tpu.vector_store %arg7[%c0_18, %c0_19], %40 {strides = array<i32>} : memref<8x128xf32, #tpu.memory_space<vmem>>, vector<8x128xf32>,
    } else {
    }
    %c0_i32_5 = arith.constant 0 : i32
    %11 = arith.cmpi eq, %arg1, %c0_i32_5 : i32
    %12 = arith.extui %11 : i1 to i32
    %c0_i32_6 = arith.constant 0 : i32
    %13 = arith.cmpi ne, %12, %c0_i32_6 : i32
    scf.if %13 {
      %c0 = arith.constant 0 : index
      %c0_7 = arith.constant 0 : index
      %14 = vector.load %arg7[%c0, %c0_7] : memref<8x128xf32, #tpu.memory_space<vmem>>, vector<8x128xf32>
      %15 = vector.shape_cast %14 : vector<8x128xf32> to vector<1x8x128xf32>
      %cst = arith.constant dense<0.000000e+00> : vector<1xf32>
      %16 = vector.multi_reduction <add>, %15, %cst [1, 2] : vector<1x8x128xf32> to vector<1xf32>
      %17 = vector.shape_cast %16 : vector<1xf32> to vector<1x1x1xf32>
      %18 = vector.extract %17[0, 0, 0] : f32 from vector<1x1x1xf32>
      %19 = vector.broadcast %18 : f32 to vector<1x1xf32>
      %cst_8 = arith.constant 0.000000e+00 : f32
      %20 = vector.broadcast %cst_8 : f32 to vector<1x1xf32>
      %21 = arith.subf %20, %19 : vector<1x1xf32>
      %c0_9 = arith.constant 0 : index
      %c0_10 = arith.constant 0 : index
      %22 = vector.load %arg4[%c0_9, %c0_10] : memref<1x64xf32, #tpu.memory_space<vmem>>, vector<1x64xf32>
      %c0_11 = arith.constant 0 : index
      %c0_12 = arith.constant 0 : index
      %23 = vector.load %arg5[%c0_11, %c0_12] : memref<1x64xf32, #tpu.memory_space<vmem>>, vector<1x64xf32>
      %cst_13 = arith.constant 1.000000e+00 : f32
      %24 = vector.broadcast %cst_13 : f32 to vector<1x64xf32>
      %25 = arith.addf %24, %23 : vector<1x64xf32>
      %26 = arith.mulf %22, %22 : vector<1x64xf32>
      %27 = arith.subf %25, %26 : vector<1x64xf32>
      %28 = math.exp %23 : vector<1x64xf32>
      %29 = arith.subf %27, %28 : vector<1x64xf32>
      %30 = vector.shape_cast %29 : vector<1x64xf32> to vector<1x1x64xf32>
      %cst_14 = arith.constant dense<0.000000e+00> : vector<1xf32>
      %31 = vector.multi_reduction <add>, %30, %cst_14 [1, 2] : vector<1x1x64xf32> to vector<1xf32>
      %32 = vector.shape_cast %31 : vector<1xf32> to vector<1x1x1xf32>
      %33 = vector.extract %32[0, 0, 0] : f32 from vector<1x1x1xf32>
      %34 = vector.broadcast %33 : f32 to vector<1x1xf32>
      %cst_15 = arith.constant -5.000000e-01 : f32
      %35 = vector.broadcast %cst_15 : f32 to vector<1x1xf32>
      %36 = arith.mulf %35, %34 : vector<1x1xf32>
      %c0_i32_16 = arith.constant 0 : i32
      %37 = arith.cmpi eq, %arg0, %c0_i32_16 : i32
      %cst_17 = arith.constant 0.000000e+00 : f32
      %38 = vector.broadcast %cst_17 : f32 to vector<1x1xf32>
      %39 = arith.select %37, %36, %38 : vector<1x1xf32>
      %40 = arith.addf %21, %39 : vector<1x1xf32>
      %c0_18 = arith.constant 0 : index
      %c0_19 = arith.constant 0 : index
      %41 = vector.load %arg6[%c0_18, %c0_19] : memref<1x1xf32, #tpu.memory_space<vmem>>, vector<1x1xf32>
      tpu.vector_store %arg6[%c0_18, %c0_19], %40 {strides = array<i32>} : memref<1x1xf32, #tpu.memory_space<vmem>>, vector<1x1xf32>,
    } else {
    }
    return
  }
  func.func @transform_0(%arg0: i32, %arg1: i32) -> (i32, i32) {
    %c1_i32 = arith.constant 1 : i32
    %0 = arith.muli %arg0, %c1_i32 : i32
    %1 = arith.addi %0, %arg1 : i32
    %c0_i32 = arith.constant 0 : i32
    %2 = arith.minsi %1, %c0_i32 : i32
    %c0_i32_0 = arith.constant 0 : i32
    %c0_i32_1 = arith.constant 0 : i32
    return %2, %c0_i32_0 : i32, i32
  }
  func.func @transform_1(%arg0: i32, %arg1: i32) -> (i32, i32) {
    %c1_i32 = arith.constant 1 : i32
    %0 = arith.muli %arg0, %c1_i32 : i32
    %1 = arith.addi %0, %arg1 : i32
    %c0_i32 = arith.constant 0 : i32
    %2 = arith.minsi %1, %c0_i32 : i32
    %c0_i32_0 = arith.constant 0 : i32
    %c0_i32_1 = arith.constant 0 : i32
    return %2, %c0_i32_0 : i32, i32
  }
  func.func @transform_2(%arg0: i32, %arg1: i32) -> (i32, i32) {
    %c0_i32 = arith.constant 0 : i32
    %c0_i32_0 = arith.constant 0 : i32
    %c0_i32_1 = arith.constant 0 : i32
    return %c0_i32, %c0_i32_0 : i32, i32
  }
  func.func @transform_3(%arg0: i32, %arg1: i32) -> (i32, i32) {
    %c0_i32 = arith.constant 0 : i32
    %c0_i32_0 = arith.constant 0 : i32
    %c0_i32_1 = arith.constant 0 : i32
    return %c0_i32, %c0_i32_0 : i32, i32
  }
  func.func @transform_4(%arg0: i32, %arg1: i32) -> (i32, i32) {
    %c0_i32 = arith.constant 0 : i32
    %c0_i32_0 = arith.constant 0 : i32
    return %arg0, %c0_i32 : i32, i32
  }
}

</mosaic_0001>

<bundles_post_ra>
// kernel: tpu_custom_call.1
= control target key start
LH: loop header
LB: loop body
LE: loop exit
PB: predicated region body
PF: predicated region fallthrough
CT: control target
= control target key end

     0   :  { %9 = vsyncpa [#allocation4], 0  ;;  %s343_s0 = inlined_call_operand.hbm [shape: f32[16,128], index: 0, kind: input, shape index: {}]   ;;  %s344_s1 = inlined_call_operand.hbm [shape: f32[16,128], index: 1, kind: input, shape index: {}]   ;;  %s345_s2 = inlined_call_operand.vmem [shape: f32[1,64], index: 2, kind: input, shape index: {}]   ;;  %s346_s3 = inlined_call_operand.vmem [shape: f32[1,64], index: 3, kind: input, shape index: {}]   ;;  %s347_s4 = inlined_call_operand.hbm [shape: f32[1,1], index: 4, kind: output, shape index: {}]  }
   0x1   :  { %10 = vsyncpa [#allocation7], 0 }
   0x2   :  { %11 = vsyncpa [#allocation5], 0  ;;  %s298_s15 = smov [#allocation3]  }
   0x3   :  { %s23_s16 = sshll.u32 %s298_s15, 4  ;;  %s24_s16 = int_to_ptr.vmem [resolvable:$true] %s23_s16 }
   0x4   :  { %s240_s17 = scalar_lea.vmem %s24_s16, 256  ;;  %p245_p1 = scmp.lt.s32.totalorder %s24_s16, %s24_s16 }
   0x5   :  { %p241_p0 = scmp.ne.s32.totalorder %s24_s16, %s240_s17  ;;  %p246_p2 = scmp.lt.s32.totalorder %s240_s17, %s240_s17 }
   0x7   :  { %p247_p3 = por %p246_p2, %p245_p1 }
   0x9   :  { %p248_p4 = pnand %p247_p3, %p241_p0 }
   0xb   :  { %251 = shalt.err (!%p248_p4)
}
   0xc   :  { %s299_s18 = smov 128   ;;  %s300_s19 = smov 8  }
   0xd   :  { %29 = dma.hbm_to_vmem [thread:$0]  %s343_s0, 256, %s24_s16, [#allocation4], %s299_s18, %s299_s18, %s300_s19  }
   0xe   :  { %s301_s22 = smov [#allocation6]  }
   0xf   :  { %s41_s23 = sshll.u32 %s301_s22, 4  ;;  %s42_s23 = int_to_ptr.vmem [resolvable:$true] %s41_s23 }
  0x10   :  { %s260_s24 = scalar_lea.vmem %s42_s23, 256  ;;  %p265_p6 = scmp.lt.s32.totalorder %s42_s23, %s42_s23 }
  0x11   :  { %p261_p5 = scmp.ne.s32.totalorder %s42_s23, %s260_s24  ;;  %p266_p7 = scmp.lt.s32.totalorder %s260_s24, %s260_s24 }
  0x13   :  { %p267_p8 = por %p266_p7, %p265_p6 }
  0x15   :  { %p268_p9 = pnand %p267_p8, %p261_p5 }
  0x17   :  { %271 = shalt.err (!%p268_p9)
}
  0x18   :  { %47 = dma.hbm_to_vmem [thread:$0]  %s344_s1, 256, %s42_s23, [#allocation7], %s299_s18, %s299_s18, %s300_s19  }
  0x19   :  { %292 = dma.done.wait [#allocation4], 256  }
  0x1a   :  { %293 = vsyncadd [#allocation4], 4294967040 }
  0x1b   :  { %294 = dma.done.wait [#allocation7], 256  }
  0x1c   :  { %295 = vsyncadd [#allocation7], 4294967040  ;;  %v76_v0 = vld [vmem:[#allocation3] sm:$0xff]  ;;  %v77_v1 = vld [vmem:[#allocation3 + $0x8] sm:$0xff]  ;;  %vm172_vm0 = vcmask 516096   ;;  %s302_s29 = smov [#allocation8]  }
  0x1d   :  { %222 = vlog2.f32 %v76_v0  ;;  %v86_v2 = vsub.f32 1.0, %v76_v0  ;;  %v87_v3 = vsub.f32 1.0, %v77_v1  ;;  %v165_v4 = vld [vmem:[%s346_s3] sm:$0x1]  ;;  %v78_v20 = vld [vmem:[#allocation6] sm:$0xff]  ;;  %v79_v22 = vld [vmem:[#allocation6 + $0x8] sm:$0xff] }
  0x1e   :  { %224 = vlog2.f32 %v77_v1  ;;  %v169_v5 = vmul.f32 1.442695, %v165_v4  ;;  %v164_v11 = vld [vmem:[%s345_s2] sm:$0x1]  ;;  %v166_v18 = vadd.f32 1.0, %v165_v4  ;;  %s199_s30 = sshll.u32 %s302_s29, 4  ;;  %s200_s30 = int_to_ptr.vmem [resolvable:$true] %s199_s30 }
  0x1f   :  { %226 = vlog2.f32 %v86_v2  ;;  %v167_v19 = vmul.f32 %v164_v11, %v164_v11  ;;  %vm191_vm1 = vcmask 0   ;;  %s272_s5 = scalar_lea.vmem %s200_s30, 16  ;;  %s276_s6 = scalar_lea.vmem %s200_s30, 32 }
  0x20   :  { %228 = vlog2.f32 %v87_v3  ;;  %p273_p10 = scmp.ne.s32.totalorder %s200_s30, %s272_s5  ;;  %p277_p11 = scmp.lt.s32.totalorder %s200_s30, %s200_s30 }
  0x21   :  { %230 = vpow2.f32 %v169_v5  ;;  %v168_v26 = vsub.f32 %v166_v18, %v167_v19  ;;  %p278_p12 = scmp.lt.s32.totalorder %s276_s6, %s272_s5 }
  0x23   :  { %p279_p13 = por %p278_p12, %p277_p11 }
  0x25   :  { %p280_p0 = pnand %p279_p13, %p273_p10 }
  0x2a   :  { %v223_v6 = vpop.eup %222 }
  0x2b   :  { %v225_v7 = vpop.eup %224  ;;  %v81_v8 = vmul.f32 0.6931472, %v223_v6 }
  0x2c   :  { %v227_v9 = vpop.eup %226  ;;  %v83_v10 = vmul.f32 0.6931472, %v225_v7 }
  0x2d   :  { %v229_v12 = vpop.eup %228  ;;  %v84_v13 = vmax.f32 %v81_v8, -100.0  ;;  %v89_v14 = vmul.f32 0.6931472, %v227_v9 }
  0x2e   :  { %v85_v15 = vmax.f32 %v83_v10, -100.0  ;;  %v91_v16 = vmul.f32 0.6931472, %v229_v12  ;;  %v231_v27 = vpop.eup %230 }
  0x2f   :  { %v92_v17 = vmax.f32 %v89_v14, -100.0  ;;  %v171_v31 = vsub.f32 %v168_v26, %v231_v27 }
  0x30   :  { %v93_v21 = vmax.f32 %v91_v16, -100.0 }
  0x31   :  { %v94_v23 = vsub.f32 %v84_v13, %v92_v17  ;;  %v173_v33 = vsel %vm172_vm0, %v171_v31, 0.0 }
  0x32   :  { %v95_v24 = vsub.f32 %v85_v15, %v93_v21 }
  0x33   :  { %v96_v25 = vmul.f32 %v94_v23, %v78_v20 }
  0x34   :  { %v97_v28 = vmul.f32 %v95_v24, %v79_v22 }
  0x35   :  { %v98_v29 = vadd.f32 %v96_v25, %v92_v17 }
  0x36   :  { %v99_v30 = vadd.f32 %v97_v28, %v93_v21 }
  0x38   :  { %v101_v32 = vadd.f32 %v99_v30, %v98_v29 }
  0x3a   :  { %153 = vadd.xlane.f32.xlu0 %v101_v32 }
  0x3e   :  { %174 = vadd.xlane.f32.xlu0 %v173_v33 }
  0xc3   :  { %v154_v34 = vpop.xlane.xlu0 %153 }
  0xc4   :  { %v155_v35 = vrot.slane %v154_v34, 4 }
  0xc6   :  { %v156_v36 = vadd.f32 %v155_v35, %v154_v34 }
  0xc7   :  { %v175_v37 = vpop.xlane.xlu0 %174 }
  0xc8   :  { %v157_v38 = vrot.slane %v156_v36, 2  ;;  %v176_v39 = vrot.slane %v175_v37, 4 }
  0xca   :  { %v177_v40 = vadd.f32 %v176_v39, %v175_v37  ;;  %v158_v41 = vadd.f32 %v157_v38, %v156_v36 }
  0xcc   :  { %v178_v42 = vrot.slane %v177_v40, 2  ;;  %v159_v43 = vrot.slane %v158_v41, 1 }
  0xce   :  { %v179_v44 = vadd.f32 %v178_v42, %v177_v40  ;;  %v160_v45 = vadd.f32 %v159_v43, %v158_v41 }
  0xd0   :  { %213 = vpush %v160_v45  ;;  %v180_v46 = vrot.slane %v179_v44, 1 }
  0xd2   :  { %v181_v47 = vadd.f32 %v180_v46, %v179_v44 }
  0xd4   :  { %215 = vpush %v181_v47 }
 0x101   :  { %s214_s2 = spop %213 }
 0x102   :  { %v162_v48 = vstv %s214_s2 }
 0x103   :  { %v163_v50 = vsub.f32 0.0, %v162_v48 }
 0x105   :  { %s216_s3 = spop %215 }
 0x106   :  { %v183_v49 = vstv %s216_s3 }
 0x107   :  { %v184_v51 = vmul.f32 -0.5, %v183_v49 }
 0x109   :  { %v190_v52 = vadd.f32 %v184_v51, %v163_v50 }
 0x10b   :  { %192 = vst.msk [vmem:[#allocation8] sm:$0x1] %vm191_vm1, %v190_v52 }
 0x10c   :  { %283 = shalt.err (!%p280_p0)
}
 0x10d   :  { %202 = dma.vmem_to_hbm [thread:$0]  %s200_s30, 16, %s347_s4, [#allocation5]  }
 0x10e   :  { %296 = dma.done.wait [#allocation5], 16  }
 0x10f   :  { %297 = vsyncadd [#allocation5], 4294967280 }
 0x110   :  { %206 = vsyncpa [#allocation4], 1 }
 0x111   :  { %207 = vsyncpa [#allocation7], 1 }
 0x112   :  { %208 = vsyncpa [#allocation5], 1 }

</bundles_post_ra>
